<compile_context>
chip_gen: v7x
topology: tpu7x:2x2x1
jax: 0.10.0
libtpu: 0.0.40
codegen_flags: <defaults>
</compile_context>

<pallas_src>
import jax
import jax.numpy as jnp
from jax.experimental import pallas as pl
from jax.experimental.pallas import tpu as pltpu


def _cumsum_kernel(lens_ref, x_ref, o_ref):
    """One grid step: masked cumsum along time for one W-lane chunk.

    lens_ref: (1, W) int32 -- valid length for each lane (seq_len of the batch
              element the lane belongs to; 0 for padded lanes).
    x_ref:    (L, W)       -- lane-sheet chunk of the embeddings.
    o_ref:    (L, W)       -- masked inclusive cumsum along axis 0 (time).
    """
    L, W = x_ref.shape
    x = x_ref[...]

    # Sequence-length mask: time-position iota vs. per-lane valid length.
    pos = jax.lax.broadcasted_iota(jnp.int32, (L, W), 0)
    xm = jnp.where(pos < lens_ref[...], x, jnp.zeros_like(x))

    # Inclusive cumsum along time == lower-triangular-ones matmul (one wide
    # MXU op per grid step; f32 accumulation).  tri is rebuilt per step: cheap
    # VPU work co-issued under the matmul, no HBM traffic, megacore-safe.
    row = jax.lax.broadcasted_iota(jnp.int32, (L, L), 0)
    col = jax.lax.broadcasted_iota(jnp.int32, (L, L), 1)
    tri = (row >= col).astype(x.dtype)  # exact 0/1 in f32 or bf16

    out = jnp.dot(tri, xm, preferred_element_type=jnp.float32)
    o_ref[...] = out.astype(o_ref.dtype)


def cumsum_model_forward(embeddings, seq_lens, times=None, return_states=False):
    """JAX/Pallas equivalent of CumSumModel.forward.

    Args:
        embeddings: (B, L, D) float payload.
        seq_lens:   (B,) int valid lengths.
        times:      (B, L) timestamps (only carried through for `states`).
        return_states: if truthy, also return states (1, B, L, D).

    Returns:
        (outputs, states) where outputs is the (B, L, D) masked cumsum over L.
    """
    B, L, D = embeddings.shape
    dtype = embeddings.dtype
    itemsize = jnp.dtype(dtype).itemsize
    seq_lens = seq_lens.astype(jnp.int32)

    total = B * D  # number of independent cumsum columns (lanes)

    # ---- lanes per grid step -------------------------------------------------
    # in+out blocks are double-buffered: 4 * L * W * itemsize bytes per step.
    vmem_block_budget = 12 * 1024 * 1024
    w_cap = max(128, (vmem_block_budget // (4 * L * itemsize)) // 128 * 128)
    W = max(128, min(512, w_cap, ((total + 127) // 128) * 128))

    total_pad = ((total + W - 1) // W) * W
    n_steps = total_pad // W

    # ---- lane-sheet layout: (B, L, D) -> (L, B*D), pad lanes to total_pad ----
    x_sheet = jnp.transpose(embeddings, (1, 0, 2)).reshape(L, total)
    lens_sheet = jnp.repeat(seq_lens, D).reshape(1, total)
    if total_pad != total:
        x_sheet = jnp.pad(x_sheet, ((0, 0), (0, total_pad - total)))
        lens_sheet = jnp.pad(lens_sheet, ((0, 0), (0, total_pad - total)))

    # Explicit VMEM limit: raises v5e's 16 MiB scoped default when needed,
    # stays comfortably inside v7x's 64 MiB physical VMEM.
    block_bytes = L * W * itemsize
    vmem_bytes = 4 * block_bytes + 4 * W * 4 + L * L * itemsize + (1 << 20)
    vmem_limit = int(min(96 * 1024 * 1024, max(32 * 1024 * 1024, 2 * vmem_bytes)))

    out_sheet = pl.pallas_call(
        _cumsum_kernel,
        out_shape=jax.ShapeDtypeStruct((L, total_pad), dtype),
        grid_spec=pltpu.PrefetchScalarGridSpec(
            num_scalar_prefetch=0,
            grid=(n_steps,),
            in_specs=[
                pl.BlockSpec((1, W), lambda i: (0, i)),   # per-lane valid length
                pl.BlockSpec((L, W), lambda i: (0, i)),   # embeddings lane chunk
            ],
            out_specs=pl.BlockSpec((L, W), lambda i: (0, i)),
        ),
        compiler_params=pltpu.CompilerParams(
            dimension_semantics=("parallel",),   # independent lane chunks
            vmem_limit_bytes=vmem_limit,
        ),
    )(lens_sheet, x_sheet)

    # ---- unpack lane sheet back to (B, L, D) ---------------------------------
    outputs = out_sheet[:, :total].reshape(L, B, D).transpose(1, 0, 2)

    # states = embeddings.payload[None]  (plain container glue, no compute)
    states = embeddings[None] if return_states else None
    return outputs, states


def _reference_forward(embeddings, seq_lens):
    """Pure-JAX reference mirroring the PyTorch semantics."""
    B, L, D = embeddings.shape
    mask = (jnp.arange(L)[None, :] < seq_lens[:, None]).astype(embeddings.dtype)
    return jnp.cumsum(embeddings * mask[:, :, None], axis=1)


if __name__ == "__main__":
    key = jax.random.PRNGKey(0)
    B, L, D = 2, 8, 32  # batch, time, hidden

    k_emb, k_t = jax.random.split(key)
    embeddings = jax.random.normal(k_emb, (B, L, D), dtype=jnp.float32)
    times = jnp.cumsum(jax.random.uniform(k_t, (B, L), dtype=jnp.float32), axis=1)
    seq_lens = jnp.array([5, 8], dtype=jnp.int32)  # ragged valid lengths

    outputs, states = cumsum_model_forward(
        embeddings, seq_lens, times=times, return_states=True)
    outputs = jax.block_until_ready(outputs)

    ref = _reference_forward(embeddings, seq_lens)
    assert outputs.shape == (B, L, D)
    assert states.shape == (1, B, L, D)
    assert jnp.allclose(outputs, ref, atol=1e-5, rtol=1e-5), "mismatch vs reference"

    print("KERNEL_OK")
</pallas_src>

<mosaic_0001>
module attributes {stable_mosaic.version = 11 : i64} {
  func.func @_cumsum_kernel(%arg0: i32, %arg1: memref<1x128xi32, #tpu.memory_space<vmem>>, %arg2: memref<8x128xf32, #tpu.memory_space<vmem>>, %arg3: memref<8x128xf32, #tpu.memory_space<vmem>>) attributes {dimension_semantics = [#tpu.dimension_semantics<parallel>], iteration_bounds = array<i64: 1>, scalar_prefetch = 0 : i64, scratch_operands = 0 : i64, tpu.core_type = #tpu.core_type<tc>, window_params = [{transform_indices = @transform_0, window_bounds = array<i64: 1, 128>}, {transform_indices = @transform_1, window_bounds = array<i64: 8, 128>}, {transform_indices = @transform_2, window_bounds = array<i64: 8, 128>}]} {
    %c0 = arith.constant 0 : index
    %c0_0 = arith.constant 0 : index
    %0 = vector.load %arg2[%c0, %c0_0] : memref<8x128xf32, #tpu.memory_space<vmem>>, vector<8x128xf32>
    %1 = tpu.iota {dimensions = array<i32: 0>} : vector<8x128xi32>
    %c0_1 = arith.constant 0 : index
    %c0_2 = arith.constant 0 : index
    %2 = vector.load %arg1[%c0_1, %c0_2] : memref<1x128xi32, #tpu.memory_space<vmem>>, vector<1x128xi32>
    %3 = vector.broadcast %2 : vector<1x128xi32> to vector<8x128xi32>
    %4 = arith.cmpi slt, %1, %3 : vector<8x128xi32>
    %cst = arith.constant 0.000000e+00 : f32
    %5 = vector.broadcast %cst : f32 to vector<8x128xf32>
    %6 = arith.select %4, %0, %5 : vector<8x128xi1>, vector<8x128xf32>
    %7 = tpu.iota {dimensions = array<i32: 0>} : vector<8x8xi32>
    %8 = tpu.iota {dimensions = array<i32: 1>} : vector<8x8xi32>
    %9 = arith.cmpi sge, %7, %8 : vector<8x8xi32>
    %10 = arith.extui %9 : vector<8x8xi1> to vector<8x8xi32>
    %11 = arith.sitofp %10 : vector<8x8xi32> to vector<8x8xf32>
    %cst_3 = arith.constant dense<0.000000e+00> : vector<8x128xf32>
    %12 = tpu.matmul %11, %6, %cst_3 {dimension_numbers = #tpu.dot_dimension_numbers<[1], [0], [0], [1], [0, 0, 1, 1], [], []>} : vector<8x8xf32>, vector<8x128xf32>, vector<8x128xf32> -> vector<8x128xf32>
    %c0_4 = arith.constant 0 : index
    %c0_5 = arith.constant 0 : index
    %13 = vector.load %arg3[%c0_4, %c0_5] : memref<8x128xf32, #tpu.memory_space<vmem>>, vector<8x128xf32>
    tpu.vector_store %arg3[%c0_4, %c0_5], %12 {strides = array<i32>} : memref<8x128xf32, #tpu.memory_space<vmem>>, vector<8x128xf32>,
    return
  }
  func.func @transform_0(%arg0: i32) -> (i32, i32) {
    %c0_i32 = arith.constant 0 : i32
    %c0_i32_0 = arith.constant 0 : i32
    return %c0_i32, %arg0 : i32, i32
  }
  func.func @transform_1(%arg0: i32) -> (i32, i32) {
    %c0_i32 = arith.constant 0 : i32
    %c0_i32_0 = arith.constant 0 : i32
    return %c0_i32, %arg0 : i32, i32
  }
  func.func @transform_2(%arg0: i32) -> (i32, i32) {
    %c0_i32 = arith.constant 0 : i32
    %c0_i32_0 = arith.constant 0 : i32
    return %c0_i32, %arg0 : i32, i32
  }
}

</mosaic_0001>

<bundles_post_ra>
// kernel: tpu_custom_call.1
= control target key start
LH: loop header
LB: loop body
LE: loop exit
PB: predicated region body
PF: predicated region fallthrough
CT: control target
= control target key end

     0   :  { %7 = vsyncpa [#allocation3], 0  ;;  %s286_s0 = inlined_call_operand.hbm [shape: s32[1,128], index: 0, kind: input, shape index: {}]   ;;  %s287_s1 = inlined_call_operand.hbm [shape: f32[8,128], index: 1, kind: input, shape index: {}]   ;;  %s288_s2 = inlined_call_operand.hbm [shape: f32[8,128], index: 2, kind: output, shape index: {}]  }
   0x1   :  { %8 = vsyncpa [#allocation6], 0 }
   0x2   :  { %9 = vsyncpa [#allocation4], 0  ;;  %s230_s9 = smov [#allocation2]   ;;  %s231_s11 = smov [#allocation5]  }
   0x3   :  { %s16_s10 = sshll.u32 %s230_s9, 4  ;;  %s26_s12 = sshll.u32 %s231_s11, 4  ;;  %s17_s10 = int_to_ptr.vmem [resolvable:$true] %s16_s10  ;;  %s27_s12 = int_to_ptr.vmem [resolvable:$true] %s26_s12 }
   0x4   :  { %s158_s15 = scalar_lea.hbm %s286_s0, 16 }
   0x5   :  { %p159_p0 = scmp.ne.s32.totalorder %s286_s0, %s158_s15  ;;  %p162_p1 = scmp.lt.u32.totalorder %s158_s15, %s286_s0 }
   0x7   :  { %p164_p2 = pnand %p162_p1, %p159_p0 }
   0x9   :  { %167 = shalt.err (!%p164_p2)
}
   0xa   :  { %s168_s20 = scalar_lea.vmem %s17_s10, 16  ;;  %s172_s21 = scalar_lea.vmem %s17_s10, 32 }
   0xb   :  { %p169_p3 = scmp.ne.s32.totalorder %s17_s10, %s168_s20  ;;  %p173_p4 = scmp.lt.s32.totalorder %s17_s10, %s17_s10 }
   0xc   :  { %p174_p5 = scmp.lt.s32.totalorder %s172_s21, %s168_s20 }
   0xe   :  { %p175_p6 = por %p174_p5, %p173_p4 }
  0x10   :  { %p176_p7 = pnand %p175_p6, %p169_p3 }
  0x12   :  { %179 = shalt.err (!%p176_p7)
}
  0x13   :  { %19 = dma.hbm_to_vmem [thread:$0]  %s286_s0, 16, %s17_s10, [#allocation3]  }
  0x14   :  { %s180_s26 = scalar_lea.hbm %s287_s1, 128 }
  0x15   :  { %p181_p8 = scmp.ne.s32.totalorder %s287_s1, %s180_s26  ;;  %p184_p9 = scmp.lt.u32.totalorder %s180_s26, %s287_s1 }
  0x17   :  { %p186_p10 = pnand %p184_p9, %p181_p8 }
  0x19   :  { %189 = shalt.err (!%p186_p10)
}
  0x1a   :  { %s190_s3 = scalar_lea.vmem %s27_s12, 128  ;;  %p195_p12 = scmp.lt.s32.totalorder %s27_s12, %s27_s12 }
  0x1b   :  { %p191_p11 = scmp.ne.s32.totalorder %s27_s12, %s190_s3  ;;  %p196_p13 = scmp.lt.s32.totalorder %s190_s3, %s190_s3 }
  0x1d   :  { %p197_p0 = por %p196_p13, %p195_p12 }
  0x1f   :  { %p198_p1 = pnand %p197_p0, %p191_p11 }
  0x21   :  { %201 = shalt.err (!%p198_p1)
}
  0x22   :  { %29 = dma.hbm_to_vmem [thread:$0]  %s287_s1, 128, %s27_s12, [#allocation6]  }
  0x23   :  { %224 = dma.done.wait [#allocation3], 16  }
  0x24   :  { %225 = vsyncadd [#allocation3], 4294967280 }
  0x25   :  { %226 = dma.done.wait [#allocation6], 128  }
  0x26   :  { %227 = vsyncadd [#allocation6], 4294967168  ;;  %v37_v0 = vlaneseq  ;;  %v232_v1 = vmov 0.0   ;;  %vm233_vm0 = vmmov 0   ;;  %v36_v4 = vld [vmem:[#allocation5] sm:$0xff]  ;;  %vm51_vm2 = vcmask 64512  }
  0x27   :  { %148 = vmatprep.subr.mxu0 %v232_v1  ;;  %150 = vmatprep.mubr.msk.f32.mxu0 %vm233_vm0, %v232_v1  ;;  %v142_v5 = vld [vmem:[#allocation2] ss:$0 sm:$0xff]  ;;  %s234_s1 = smov [#allocation7]  }
  0x28   :  { %v38_v2 = vshrl.u32 %v37_v0, 7  ;;  %v47_v3 = vand.u32 127, %v37_v0  ;;  %s132_s5 = sshll.u32 %s234_s1, 4  ;;  %s133_s5 = int_to_ptr.vmem [resolvable:$true] %s132_s5 }
  0x29   :  { %s202_s6 = scalar_lea.vmem %s133_s5, 128  ;;  %p207_p3 = scmp.lt.s32.totalorder %s133_s5, %s133_s5 }
  0x2a   :  { %vm48_vm1 = vcmp.ge.s32.totalorder %v38_v2, %v47_v3  ;;  %vm44_vm3 = vcmp.lt.s32.totalorder %v38_v2, %v142_v5  ;;  %p203_p2 = scmp.ne.s32.totalorder %s133_s5, %s202_s6  ;;  %p208_p4 = scmp.lt.s32.totalorder %s202_s6, %s202_s6 }
  0x2b   :  { %v143_v6 = vsel %vm48_vm1, 1.0, %v232_v1  ;;  %149 = vmatpush3.msk.msra.mxu0 %vm44_vm3, %v36_v4 }
  0x2c   :  { %151 = vmatmul.mubr.msk.f32.vlgmr.msra.gmra.mrb[0].mxu0 %vm51_vm2, %v143_v6  ;;  %p209_p5 = por %p208_p4, %p207_p3 }
  0x2e   :  { %p210_p6 = pnand %p209_p5, %p203_p2 }
  0xff   :  { %v121_v7 = vpop.f32.mrb[0].mxu0 }
 0x100   :  { %125 = vst [vmem:[#allocation7] sm:$0xff] %v121_v7  ;;  %v152_v8 = vpop.f32.mrb[1].mxu0 }
 0x101   :  { %213 = shalt.err (!%p210_p6)
}
 0x102   :  { %s214_s9 = scalar_lea.hbm %s288_s2, 128 }
 0x103   :  { %p215_p7 = scmp.ne.s32.totalorder %s288_s2, %s214_s9  ;;  %p218_p8 = scmp.lt.u32.totalorder %s214_s9, %s288_s2 }
 0x105   :  { %p220_p9 = pnand %p218_p8, %p215_p7 }
 0x107   :  { %223 = shalt.err (!%p220_p9)
}
 0x108   :  { %135 = dma.vmem_to_hbm [thread:$0]  %s133_s5, 128, %s288_s2, [#allocation4]  }
 0x109   :  { %228 = dma.done.wait [#allocation4], 128  }
 0x10a   :  { %229 = vsyncadd [#allocation4], 4294967168 }
 0x10b   :  { %139 = vsyncpa [#allocation3], 1 }
 0x10c   :  { %140 = vsyncpa [#allocation6], 1 }
 0x10d   :  { %141 = vsyncpa [#allocation4], 1 }

</bundles_post_ra>
